<compile_context>
chip_gen: v5e
topology: v5e:2x2
jax: 0.10.0
libtpu: 0.0.40
codegen_flags: <defaults>
</compile_context>

<pallas_src>
import math

import jax
import jax.numpy as jnp
from jax.experimental import pallas as pl
from jax.experimental.pallas import tpu as pltpu


def _round_up(n: int, m: int) -> int:
    return ((n + m - 1) // m) * m


def simple_nn_kernel(x_ref, w1_ref, b1_ref, w2_ref, b2_ref,
                     w3_ref, b3_ref, w4_ref, b4_ref, o_ref):
    """Fused feature-major MLP forward on one (10, TILE_B) batch tile.

    Weights are in PyTorch (out_features, in_features) layout, biases (out, 1),
    so each layer is h = act(W @ h_prev + b) with batch on the lane axis.
    Matmuls accumulate in f32 (preferred_element_type); elementwise math
    (bias add, ReLU, sigmoid) stays in f32 regardless of the MXU input dtype.
    """
    wdt = w1_ref.dtype  # MXU input dtype (f32 or bf16)

    x = x_ref[...]                                                    # (10, TILE_B)
    h = jnp.dot(w1_ref[...], x, preferred_element_type=jnp.float32) + b1_ref[...]
    h = jnp.maximum(h, 0.0)                                           # (128, TILE_B) f32

    h = jnp.dot(w2_ref[...], h.astype(wdt),
                preferred_element_type=jnp.float32) + b2_ref[...]
    h = jnp.maximum(h, 0.0)                                           # (64, TILE_B)

    h = jnp.dot(w3_ref[...], h.astype(wdt),
                preferred_element_type=jnp.float32) + b3_ref[...]
    h = jnp.maximum(h, 0.0)                                           # (32, TILE_B)

    z = jnp.dot(w4_ref[...], h.astype(wdt),
                preferred_element_type=jnp.float32) + b4_ref[...]     # (1, TILE_B)

    # sigmoid(z) = 1 / (1 + exp(-z)); exp goes to the EUP slot.
    # exp(-z) -> inf for very negative z gives 1/(1+inf) = 0: correct limit.
    o_ref[...] = pl.reciprocal(1.0 + jnp.exp(-z), approx=False).astype(o_ref.dtype)


def _choose_tile_b(batch: int, tile_b: int) -> int:
    """Pick the batch tile: big (amortize per-step overhead), multiple of 128,
    capped for v7x VMEM, and >= 2 grid steps when batch >= 256 (v7x megacore)."""
    if batch <= 128:
        # Single full-array block; block dims equal the array dims.
        return batch
    tile_b = max(128, min(_round_up(tile_b, 128), 16384))   # v7x: keep <= ~16k columns
    tile_b = min(tile_b, _round_up(batch, 128))
    # Guarantee >= 2 grid steps so both v7x TensorCores get work.
    while batch >= 256 and tile_b > 128 and -(-batch // tile_b) < 2:
        tile_b = _round_up(tile_b // 2, 128)
    return tile_b


def simple_nn_forward(x, params, *, tile_b=4096, compute_dtype=jnp.bfloat16):
    """Run the fused MLP. x: (B, 10) f32. Returns (B, 1) f32.

    params: ((w1, b1), ..., (w4, b4)) with w_i in PyTorch (out, in) layout and
    b_i as (out, 1) float32. tile_b is sweepable (2048-8192 recommended on
    large batches); compute_dtype is the MXU input dtype (bf16 default on all
    generations, f32 accumulation always).
    """
    (w1, b1), (w2, b2), (w3, b3), (w4, b4) = params
    batch, in_dim = x.shape

    tile_b = _choose_tile_b(batch, tile_b)
    grid = (pl.cdiv(batch, tile_b),)   # ragged last block is masked by Pallas (no jnp.pad)

    # Feature-major (lane-dense) input in the MXU dtype. Expected to fuse into
    # x's producer; if HLO shows a materialized transpose, fold the relayout
    # into layer 1 with lax.dot_general contracting x's last dim instead.
    x_t = x.astype(compute_dtype).T                                    # (10, B)

    ws = tuple(w.astype(compute_dtype) for w in (w1, w2, w3, w4))
    bs = (b1, b2, b3, b4)   # biases stay f32 (added to the f32 accumulator)

    def resident(arr):
        # Constant block index -> fetched once, stays VMEM-resident across steps.
        return pl.BlockSpec(arr.shape, lambda i: (0, 0))

    # x stream: ~32 B/column (bf16) per tile, double-buffered by Pallas.
    # (If DMA shows exposed, add pipeline_mode=pl.Buffered(3) here.)
    in_specs = [pl.BlockSpec((in_dim, tile_b), lambda i: (0, i))]
    for w, b in zip(ws, bs):
        in_specs.append(resident(w))
        in_specs.append(resident(b))

    # Explicit VMEM budget: ~2.5 KB/column covers h1/h2/h3 f32 + bf16 copies +
    # double-buffered x/out tiles, plus ~3 MiB for resident weights & compiler
    # scratch. Capped at 48 MiB so it stays inside v7x's 64 MiB physical VMEM.
    vmem_limit = int(min(max(tile_b * 2560 + (3 << 20), 4 << 20), 48 << 20))

    out = pl.pallas_call(
        simple_nn_kernel,
        out_shape=jax.ShapeDtypeStruct((1, batch), jnp.float32),
        grid_spec=pltpu.PrefetchScalarGridSpec(
            num_scalar_prefetch=0,
            grid=grid,
            in_specs=in_specs,
            out_specs=pl.BlockSpec((1, tile_b), lambda i: (0, i)),
        ),
        compiler_params=pltpu.CompilerParams(
            dimension_semantics=("parallel",),
            vmem_limit_bytes=vmem_limit,
        ),
    )(x_t, ws[0], bs[0], ws[1], bs[1], ws[2], bs[2], ws[3], bs[3])

    return out.T                                                       # (B, 1) f32


def init_linear(key, fan_in, fan_out):
    """nn.Linear default init U(-1/sqrt(fan_in), +1/sqrt(fan_in)).

    Weight in PyTorch (out, in) layout, bias as (out, 1).
    """
    kw, kb = jax.random.split(key)
    bound = 1.0 / math.sqrt(fan_in)
    w = jax.random.uniform(kw, (fan_out, fan_in), jnp.float32, -bound, bound)
    b = jax.random.uniform(kb, (fan_out, 1), jnp.float32, -bound, bound)
    return w, b


def reference_forward(x, params):
    """Pure-JAX reference (same math, batch-major, highest precision)."""
    hp = jax.lax.Precision.HIGHEST
    (w1, b1), (w2, b2), (w3, b3), (w4, b4) = params
    h = jnp.maximum(jnp.dot(x, w1.T, precision=hp) + b1.T, 0.0)
    h = jnp.maximum(jnp.dot(h, w2.T, precision=hp) + b2.T, 0.0)
    h = jnp.maximum(jnp.dot(h, w3.T, precision=hp) + b3.T, 0.0)
    z = jnp.dot(h, w4.T, precision=hp) + b4.T
    return 1.0 / (1.0 + jnp.exp(-z))


if __name__ == "__main__":
    key = jax.random.PRNGKey(0)
    kx1, kx2, k1, k2, k3, k4 = jax.random.split(key, 6)

    params = (
        init_linear(k1, 10, 128),
        init_linear(k2, 128, 64),
        init_linear(k3, 64, 32),
        init_linear(k4, 32, 1),
    )

    # Small single-block case (batch=8).
    x_small = jax.random.normal(kx1, (8, 10), jnp.float32)
    ref_small = reference_forward(x_small, params)

    out_bf16 = jax.block_until_ready(simple_nn_forward(x_small, params))  # bf16 default
    assert out_bf16.shape == (8, 1), out_bf16.shape
    assert jnp.allclose(out_bf16, ref_small, atol=5e-2, rtol=5e-2), "bf16 mismatch vs reference"

    out_f32 = jax.block_until_ready(
        simple_nn_forward(x_small, params, compute_dtype=jnp.float32))
    assert out_f32.shape == (8, 1), out_f32.shape
    assert jnp.allclose(out_f32, ref_small, atol=1e-3, rtol=1e-3), "f32 mismatch vs reference"

    # Multi-step grid with a ragged (masked) last block: batch=300 -> tile 256,
    # 2 grid steps (exercises the >=2-step / megacore path and ragged masking).
    x_med = jax.random.normal(kx2, (300, 10), jnp.float32)
    ref_med = reference_forward(x_med, params)
    out_med = jax.block_until_ready(simple_nn_forward(x_med, params))
    assert out_med.shape == (300, 1), out_med.shape
    assert jnp.allclose(out_med, ref_med, atol=5e-2, rtol=5e-2), "ragged-grid mismatch vs reference"

    print("KERNEL_OK")
</pallas_src>

<mosaic_0001>
module attributes {stable_mosaic.version = 11 : i64} {
  func.func @simple_nn_kernel(%arg0: i32, %arg1: memref<10x8xbf16, #tpu.memory_space<vmem>>, %arg2: memref<128x10xbf16, #tpu.memory_space<vmem>>, %arg3: memref<128x1xf32, #tpu.memory_space<vmem>>, %arg4: memref<64x128xbf16, #tpu.memory_space<vmem>>, %arg5: memref<64x1xf32, #tpu.memory_space<vmem>>, %arg6: memref<32x64xbf16, #tpu.memory_space<vmem>>, %arg7: memref<32x1xf32, #tpu.memory_space<vmem>>, %arg8: memref<1x32xbf16, #tpu.memory_space<vmem>>, %arg9: memref<1x1xf32, #tpu.memory_space<vmem>>, %arg10: memref<1x8xf32, #tpu.memory_space<vmem>>) attributes {dimension_semantics = [#tpu.dimension_semantics<parallel>], iteration_bounds = array<i64: 1>, scalar_prefetch = 0 : i64, scratch_operands = 0 : i64, tpu.core_type = #tpu.core_type<tc>, window_params = [{transform_indices = @transform_0, window_bounds = array<i64: 10, 8>}, {pipeline_mode = #tpu.pipeline_mode<synchronous>, transform_indices = @transform_1, window_bounds = array<i64: 128, 10>}, {pipeline_mode = #tpu.pipeline_mode<synchronous>, transform_indices = @transform_2, window_bounds = array<i64: 128, 1>}, {pipeline_mode = #tpu.pipeline_mode<synchronous>, transform_indices = @transform_3, window_bounds = array<i64: 64, 128>}, {pipeline_mode = #tpu.pipeline_mode<synchronous>, transform_indices = @transform_4, window_bounds = array<i64: 64, 1>}, {pipeline_mode = #tpu.pipeline_mode<synchronous>, transform_indices = @transform_5, window_bounds = array<i64: 32, 64>}, {pipeline_mode = #tpu.pipeline_mode<synchronous>, transform_indices = @transform_6, window_bounds = array<i64: 32, 1>}, {pipeline_mode = #tpu.pipeline_mode<synchronous>, transform_indices = @transform_7, window_bounds = array<i64: 1, 32>}, {pipeline_mode = #tpu.pipeline_mode<synchronous>, transform_indices = @transform_8, window_bounds = array<i64: 1, 1>}, {transform_indices = @transform_9, window_bounds = array<i64: 1, 8>}]} {
    %c0 = arith.constant 0 : index
    %c0_0 = arith.constant 0 : index
    %0 = vector.load %arg1[%c0, %c0_0] : memref<10x8xbf16, #tpu.memory_space<vmem>>, vector<10x8xbf16>
    %c0_1 = arith.constant 0 : index
    %c0_2 = arith.constant 0 : index
    %1 = vector.load %arg2[%c0_1, %c0_2] : memref<128x10xbf16, #tpu.memory_space<vmem>>, vector<128x10xbf16>
    %cst = arith.constant dense<0.000000e+00> : vector<128x8xf32>
    %2 = tpu.matmul %1, %0, %cst {dimension_numbers = #tpu.dot_dimension_numbers<[1], [0], [0], [1], [0, 0, 1, 1], [], []>} : vector<128x10xbf16>, vector<10x8xbf16>, vector<128x8xf32> -> vector<128x8xf32>
    %c0_3 = arith.constant 0 : index
    %c0_4 = arith.constant 0 : index
    %3 = vector.load %arg3[%c0_3, %c0_4] : memref<128x1xf32, #tpu.memory_space<vmem>>, vector<128x1xf32>
    %4 = vector.broadcast %3 : vector<128x1xf32> to vector<128x8xf32>
    %5 = arith.addf %2, %4 : vector<128x8xf32>
    %cst_5 = arith.constant 0.000000e+00 : f32
    %6 = vector.broadcast %cst_5 : f32 to vector<128x8xf32>
    %7 = arith.maximumf %5, %6 : vector<128x8xf32>
    %c0_6 = arith.constant 0 : index
    %c0_7 = arith.constant 0 : index
    %8 = vector.load %arg4[%c0_6, %c0_7] : memref<64x128xbf16, #tpu.memory_space<vmem>>, vector<64x128xbf16>
    %9 = arith.truncf %7 : vector<128x8xf32> to vector<128x8xbf16>
    %cst_8 = arith.constant dense<0.000000e+00> : vector<64x8xf32>
    %10 = tpu.matmul %8, %9, %cst_8 {dimension_numbers = #tpu.dot_dimension_numbers<[1], [0], [0], [1], [0, 0, 1, 1], [], []>} : vector<64x128xbf16>, vector<128x8xbf16>, vector<64x8xf32> -> vector<64x8xf32>
    %c0_9 = arith.constant 0 : index
    %c0_10 = arith.constant 0 : index
    %11 = vector.load %arg5[%c0_9, %c0_10] : memref<64x1xf32, #tpu.memory_space<vmem>>, vector<64x1xf32>
    %12 = vector.broadcast %11 : vector<64x1xf32> to vector<64x8xf32>
    %13 = arith.addf %10, %12 : vector<64x8xf32>
    %cst_11 = arith.constant 0.000000e+00 : f32
    %14 = vector.broadcast %cst_11 : f32 to vector<64x8xf32>
    %15 = arith.maximumf %13, %14 : vector<64x8xf32>
    %c0_12 = arith.constant 0 : index
    %c0_13 = arith.constant 0 : index
    %16 = vector.load %arg6[%c0_12, %c0_13] : memref<32x64xbf16, #tpu.memory_space<vmem>>, vector<32x64xbf16>
    %17 = arith.truncf %15 : vector<64x8xf32> to vector<64x8xbf16>
    %cst_14 = arith.constant dense<0.000000e+00> : vector<32x8xf32>
    %18 = tpu.matmul %16, %17, %cst_14 {dimension_numbers = #tpu.dot_dimension_numbers<[1], [0], [0], [1], [0, 0, 1, 1], [], []>} : vector<32x64xbf16>, vector<64x8xbf16>, vector<32x8xf32> -> vector<32x8xf32>
    %c0_15 = arith.constant 0 : index
    %c0_16 = arith.constant 0 : index
    %19 = vector.load %arg7[%c0_15, %c0_16] : memref<32x1xf32, #tpu.memory_space<vmem>>, vector<32x1xf32>
    %20 = vector.broadcast %19 : vector<32x1xf32> to vector<32x8xf32>
    %21 = arith.addf %18, %20 : vector<32x8xf32>
    %cst_17 = arith.constant 0.000000e+00 : f32
    %22 = vector.broadcast %cst_17 : f32 to vector<32x8xf32>
    %23 = arith.maximumf %21, %22 : vector<32x8xf32>
    %c0_18 = arith.constant 0 : index
    %c0_19 = arith.constant 0 : index
    %24 = vector.load %arg8[%c0_18, %c0_19] : memref<1x32xbf16, #tpu.memory_space<vmem>>, vector<1x32xbf16>
    %25 = arith.truncf %23 : vector<32x8xf32> to vector<32x8xbf16>
    %cst_20 = arith.constant dense<0.000000e+00> : vector<1x8xf32>
    %26 = tpu.matmul %24, %25, %cst_20 {dimension_numbers = #tpu.dot_dimension_numbers<[1], [0], [0], [1], [0, 0, 1, 1], [], []>} : vector<1x32xbf16>, vector<32x8xbf16>, vector<1x8xf32> -> vector<1x8xf32>
    %c0_21 = arith.constant 0 : index
    %c0_22 = arith.constant 0 : index
    %27 = vector.load %arg9[%c0_21, %c0_22] : memref<1x1xf32, #tpu.memory_space<vmem>>, vector<1x1xf32>
    %28 = vector.broadcast %27 : vector<1x1xf32> to vector<1x8xf32>
    %29 = arith.addf %26, %28 : vector<1x8xf32>
    %cst_23 = arith.constant 0.000000e+00 : f32
    %30 = vector.broadcast %cst_23 : f32 to vector<1x8xf32>
    %31 = arith.subf %30, %29 : vector<1x8xf32>
    %32 = math.exp %31 : vector<1x8xf32>
    %cst_24 = arith.constant 1.000000e+00 : f32
    %33 = vector.broadcast %cst_24 : f32 to vector<1x8xf32>
    %34 = arith.addf %33, %32 : vector<1x8xf32>
    %35 = tpu.reciprocal %34 : vector<1x8xf32> -> vector<1x8xf32>
    %c0_25 = arith.constant 0 : index
    %c0_26 = arith.constant 0 : index
    %36 = vector.load %arg10[%c0_25, %c0_26] : memref<1x8xf32, #tpu.memory_space<vmem>>, vector<1x8xf32>
    tpu.vector_store %arg10[%c0_25, %c0_26], %35 {strides = array<i32>} : memref<1x8xf32, #tpu.memory_space<vmem>>, vector<1x8xf32>,
    return
  }
  func.func @transform_0(%arg0: i32) -> (i32, i32) {
    %c0_i32 = arith.constant 0 : i32
    %c0_i32_0 = arith.constant 0 : i32
    return %c0_i32, %arg0 : i32, i32
  }
  func.func @transform_1(%arg0: i32) -> (i32, i32) {
    %c0_i32 = arith.constant 0 : i32
    %c0_i32_0 = arith.constant 0 : i32
    %c0_i32_1 = arith.constant 0 : i32
    return %c0_i32, %c0_i32_0 : i32, i32
  }
  func.func @transform_2(%arg0: i32) -> (i32, i32) {
    %c0_i32 = arith.constant 0 : i32
    %c0_i32_0 = arith.constant 0 : i32
    %c0_i32_1 = arith.constant 0 : i32
    return %c0_i32, %c0_i32_0 : i32, i32
  }
  func.func @transform_3(%arg0: i32) -> (i32, i32) {
    %c0_i32 = arith.constant 0 : i32
    %c0_i32_0 = arith.constant 0 : i32
    %c0_i32_1 = arith.constant 0 : i32
    return %c0_i32, %c0_i32_0 : i32, i32
  }
  func.func @transform_4(%arg0: i32) -> (i32, i32) {
    %c0_i32 = arith.constant 0 : i32
    %c0_i32_0 = arith.constant 0 : i32
    %c0_i32_1 = arith.constant 0 : i32
    return %c0_i32, %c0_i32_0 : i32, i32
  }
  func.func @transform_5(%arg0: i32) -> (i32, i32) {
    %c0_i32 = arith.constant 0 : i32
    %c0_i32_0 = arith.constant 0 : i32
    %c0_i32_1 = arith.constant 0 : i32
    return %c0_i32, %c0_i32_0 : i32, i32
  }
  func.func @transform_6(%arg0: i32) -> (i32, i32) {
    %c0_i32 = arith.constant 0 : i32
    %c0_i32_0 = arith.constant 0 : i32
    %c0_i32_1 = arith.constant 0 : i32
    return %c0_i32, %c0_i32_0 : i32, i32
  }
  func.func @transform_7(%arg0: i32) -> (i32, i32) {
    %c0_i32 = arith.constant 0 : i32
    %c0_i32_0 = arith.constant 0 : i32
    %c0_i32_1 = arith.constant 0 : i32
    return %c0_i32, %c0_i32_0 : i32, i32
  }
  func.func @transform_8(%arg0: i32) -> (i32, i32) {
    %c0_i32 = arith.constant 0 : i32
    %c0_i32_0 = arith.constant 0 : i32
    %c0_i32_1 = arith.constant 0 : i32
    return %c0_i32, %c0_i32_0 : i32, i32
  }
  func.func @transform_9(%arg0: i32) -> (i32, i32) {
    %c0_i32 = arith.constant 0 : i32
    %c0_i32_0 = arith.constant 0 : i32
    return %c0_i32, %arg0 : i32, i32
  }
}

</mosaic_0001>

<bundles_post_ra>
// kernel: tpu_custom_call.1
= control target key start
LH: loop header
LB: loop body
LE: loop exit
PB: predicated region body
PF: predicated region fallthrough
CT: control target
= control target key end

     0   :  { %s884_s0 = inlined_call_operand.vmem [shape: bf16[10,8], index: 0, kind: input, shape index: {}]   ;;  %s885_s1 = inlined_call_operand.vmem [shape: bf16[128,10], index: 1, kind: input, shape index: {}]   ;;  %s886_s2 = inlined_call_operand.vmem [shape: f32[128,1], index: 2, kind: input, shape index: {}]   ;;  %s887_s3 = inlined_call_operand.vmem [shape: bf16[64,128], index: 3, kind: input, shape index: {}]   ;;  %s888_s4 = inlined_call_operand.vmem [shape: f32[64,1], index: 4, kind: input, shape index: {}]   ;;  %s889_s5 = inlined_call_operand.vmem [shape: bf16[32,64], index: 5, kind: input, shape index: {}]   ;;  %s890_s6 = inlined_call_operand.vmem [shape: f32[32,1], index: 6, kind: input, shape index: {}]   ;;  %s891_s7 = inlined_call_operand.vmem [shape: bf16[1,32], index: 7, kind: input, shape index: {}]   ;;  %s892_s8 = inlined_call_operand.<no memory space> [shape: f32[1,1], index: 8, kind: input, shape index: {}]   ;;  %s893_s9 = inlined_call_operand.hbm [shape: f32[1,8], index: 9, kind: output, shape index: {}]  }
   0x1   :  { %v14_v0 = vstv %s892_s8 }
   0x2   :  { %15 = vst [vmem:[#allocation2] sm:$0x1] %v14_v0 }
   0x3   :  { %v68_v1 = vld [vmem:[%s886_s2 + $0x70] sm:$0xff]  ;;  %v66_v2 = vld [vmem:[%s886_s2 + $0x60] sm:$0xff]  ;;  %v679_v4 = vmov 0   ;;  %vm220_vm0 = vcmask 1044480   ;;  %v626_v10 = vld [vmem:[%s885_s1 + $0x28] sm:$0xff]  ;;  %vm195_vm1 = vcmask 80896  }
   0x4   :  { %v583_v3 = vld [vmem:[%s884_s0] sm:$0xf]  ;;  %647 = vset.pattern.permute.xlu1 %v679_v4  ;;  %646 = vset.pattern.permute.xlu0 %v679_v4  ;;  %v620_v5 = vld [vmem:[%s884_s0] sm:$0x10]  ;;  %v64_v7 = vld [vmem:[%s886_s2 + $0x50] sm:$0xff] }
   0x5   :  { %142 = vperm.xlu0 %646, %v68_v1   ;;  %132 = vperm.xlu1 %647, %v66_v2   ;;  %v584_v6 = vor.u32 %v620_v5, %v583_v3  ;;  %v621_v9 = vld [vmem:[%s885_s1] sm:$0xff]  ;;  %v69_v11 = vld [vmem:[%s886_s2 + $0x78] sm:$0xff]  ;;  %v67_v12 = vld [vmem:[%s886_s2 + $0x68] sm:$0xff] }
   0x6   :  { %648 = vset.pattern.permute.xlu2 %v679_v4 }
   0x7   :  { %v222_v8 = vsel %vm220_vm0, %v584_v6, 0  ;;  %122 = vperm.xlu2 %648, %v64_v7  }
   0x8   :  { %231 = vmatpush.bf16.msra.mxu0 %v222_v8  ;;  %635 = vmatpush.bf16.msra.mxu3 %v222_v8 }
   0x9   :  { %16 = vsyncpa [#allocation4], 0  ;;  %v65_v13 = vld [vmem:[%s886_s2 + $0x58] sm:$0xff]  ;;  %v63_v14 = vld [vmem:[%s886_s2 + $0x48] sm:$0xff]  ;;  %vm456_vm2 = vcmask 523264   ;;  %vm496_vm3 = vcmask 261120  }
   0xa   :  { %v62_v15 = vld [vmem:[%s886_s2 + $0x40] sm:$0xff]  ;;  %v60_v16 = vld [vmem:[%s886_s2 + $0x30] sm:$0xff]  ;;  %v622_v17 = vld [vmem:[%s885_s1 + $0x8] sm:$0xff]  ;;  %s540_s26 = sshll.u32 %s893_s9, 4  ;;  %vm531_vm7 = vcmask 57344   ;;  %s541_s26 = int_to_ptr.hbm [resolvable:$true] %s540_s26 }
   0xb   :  { %585 = vmatmul.msk.bf16.vlgmr.msra.gmra.mxu0 %vm195_vm1, %v621_v9  ;;  %590 = vmatmul.msk.bf16.vlgmr.msra.gmra.mxu3 %vm195_vm1, %v626_v10  ;;  %v627_v18 = vld [vmem:[%s885_s1 + $0x30] sm:$0xff]  ;;  %v61_v19 = vld [vmem:[%s886_s2 + $0x38] sm:$0xff]  ;;  %v58_v20 = vld [vmem:[%s886_s2 + $0x20] sm:$0xff] }
   0xc   :  { %v59_v21 = vld [vmem:[%s886_s2 + $0x28] sm:$0xff]  ;;  %v57_v22 = vld [vmem:[%s886_s2 + $0x18] sm:$0xff]  ;;  %v56_v23 = vld [vmem:[%s886_s2 + $0x10] sm:$0xff] }
   0xd   :  { %147 = vperm.xlu0 %646, %v69_v11   ;;  %137 = vperm.xlu1 %647, %v67_v12   ;;  %v54_v24 = vld [vmem:[%s886_s2] sm:$0xff]  ;;  %v623_v25 = vld [vmem:[%s885_s1 + $0x10] sm:$0xff]  ;;  %v628_v26 = vld [vmem:[%s885_s1 + $0x38] sm:$0xff] }
   0xe   :  { %v311_v27 = vld [vmem:[%s888_s4 + $0x30] sm:$0xff]  ;;  %v55_v28 = vld [vmem:[%s886_s2 + $0x8] sm:$0xff]  ;;  %v312_v29 = vld [vmem:[%s888_s4 + $0x38] sm:$0xff] }
   0xf   :  { %127 = vperm.xlu2 %648, %v65_v13   ;;  %v310_v30 = vld [vmem:[%s888_s4 + $0x28] sm:$0xff]  ;;  %v309_v31 = vld [vmem:[%s888_s4 + $0x20] sm:$0xff]  ;;  %v307_v32 = vld [vmem:[%s888_s4 + $0x10] sm:$0xff] }
  0x10   :  { %v624_v33 = vld [vmem:[%s885_s1 + $0x18] sm:$0xff]  ;;  %v305_v34 = vld [vmem:[%s888_s4] sm:$0xff]  ;;  %v306_v36 = vld [vmem:[%s888_s4 + $0x8] sm:$0xff] }
  0x11   :  { %v308_v35 = vld [vmem:[%s888_s4 + $0x18] sm:$0xff]  ;;  %v424_v38 = vld [vmem:[%s890_s6 + $0x10] sm:$0xff]  ;;  %v422_v39 = vld [vmem:[%s890_s6] sm:$0xff] }
  0x12   :  { %v425_v37 = vld [vmem:[%s890_s6 + $0x18] sm:$0xff]  ;;  %v625_v40 = vld [vmem:[%s885_s1 + $0x20] sm:$0xff]  ;;  %v423_v42 = vld [vmem:[%s890_s6 + $0x8] sm:$0xff] }
  0x13   :  { %v489_v41 = vld [vmem:[#allocation2] sm:$0x1] }
  0x15   :  { %117 = vperm.xlu1 %647, %v63_v14   ;;  %112 = vperm.xlu0 %646, %v62_v15  }
  0x17   :  { %102 = vperm.xlu2 %648, %v60_v16  }
  0x1b   :  { %586 = vmatmul.msk.bf16.gmra.mxu0 %vm195_vm1, %v622_v17  ;;  %591 = vmatmul.msk.bf16.gmra.mxu3 %vm195_vm1, %v627_v18 }
  0x1d   :  { %107 = vperm.xlu0 %646, %v61_v19   ;;  %92 = vperm.xlu1 %647, %v58_v20  }
  0x1f   :  { %97 = vperm.xlu2 %648, %v59_v21  }
  0x25   :  { %87 = vperm.xlu1 %647, %v57_v22   ;;  %82 = vperm.xlu0 %646, %v56_v23  }
  0x27   :  { %72 = vperm.xlu2 %648, %v54_v24  }
  0x2b   :  { %587 = vmatmul.msk.bf16.gmra.mxu0 %vm195_vm1, %v623_v25  ;;  %592 = vmatmul.msk.bf16.gmra.mxu3 %vm195_vm1, %v628_v26 }
  0x2d   :  { %345 = vperm.xlu1 %647, %v311_v27   ;;  %77 = vperm.xlu0 %646, %v55_v28  }
  0x2f   :  { %350 = vperm.xlu2 %648, %v312_v29  }
  0x35   :  { %340 = vperm.xlu1 %647, %v310_v30   ;;  %335 = vperm.xlu0 %646, %v309_v31  }
  0x37   :  { %325 = vperm.xlu2 %648, %v307_v32  }
  0x3b   :  { %588 = vmatmul.msk.bf16.gmra.mxu0 %vm195_vm1, %v624_v33 }
  0x3d   :  { %315 = vperm.xlu1 %647, %v305_v34   ;;  %330 = vperm.xlu0 %646, %v308_v35  }
  0x3f   :  { %320 = vperm.xlu2 %648, %v306_v36  }
  0x45   :  { %443 = vperm.xlu1 %647, %v425_v37   ;;  %438 = vperm.xlu0 %646, %v424_v38  }
  0x47   :  { %428 = vperm.xlu2 %648, %v422_v39  }
  0x4b   :  { %589 = vmatmul.msk.bf16.gmra.mxu0 %vm195_vm1, %v625_v40 }
  0x4d   :  { %492 = vperm.xlu1 %647, %v489_v41   ;;  %433 = vperm.xlu0 %646, %v423_v42  }
  0x61   :  { %v123_v43 = vpop.permute.xlu2 %122 }
  0x69   :  { %v128_v45 = vpop.permute.xlu2 %127 }
  0x71   :  { %v103_v47 = vpop.permute.xlu2 %102 }
  0x77   :  { %v143_v44 = vpop.permute.xlu0 %142  ;;  %v133_v4 = vpop.permute.xlu1 %132 }
  0x79   :  { %v98_v53 = vpop.permute.xlu2 %97 }
  0x7f   :  { %v148_v46 = vpop.permute.xlu0 %147  ;;  %v138_v8 = vpop.permute.xlu1 %137 }
  0x81   :  { %v73_v57 = vpop.permute.xlu2 %72 }
  0x87   :  { %v113_v48 = vpop.permute.xlu0 %112  ;;  %v118_v26 = vpop.permute.xlu1 %117 }
  0x88   :  { %v233_v49 = vpop.f32.mrf.mxu0 }
  0x89   :  { %v234_v58 = vadd.f32 %v233_v49, %v73_v57 }
  0x8b   :  { %v273_v63 = vmax.f32 %v234_v58, 0.0 }
  0x8e   :  { %v258_v50 = vpop.f32.mrf.mxu3 }
  0x8f   :  { %v108_v51 = vpop.permute.xlu0 %107  ;;  %v259_v16 = vadd.f32 %v258_v50, %v123_v43  ;;  %v93_v28 = vpop.permute.xlu1 %92 }
  0x90   :  { %v235_v52 = vpop.f32.mrf.mxu0 }
  0x91   :  { %v283_v21 = vmax.f32 %v259_v16, 0.0 }
  0x96   :  { %v260_v54 = vpop.f32.mrf.mxu3 }
  0x97   :  { %v83_v55 = vpop.permute.xlu0 %82  ;;  %v261_v17 = vadd.f32 %v260_v54, %v128_v45  ;;  %v88_v41 = vpop.permute.xlu1 %87  ;;  %v631_v54 = vld [vmem:[%s887_s3 + $0x10] sm:$0xff] }
  0x98   :  { %v238_v56 = vpop.f32.mrf.mxu0 }
  0x99   :  { %v284_v22 = vmax.f32 %v261_v17, 0.0  ;;  %v239_v45 = vadd.f32 %v238_v56, %v83_v55 }
  0x9b   :  { %v302_v25 = vpack.c.bf16 %v284_v22, %v283_v21 }
  0x9e   :  { %v263_v59 = vpop.f32.mrf.mxu3 }
  0x9f   :  { %v78_v60 = vpop.permute.xlu0 %77  ;;  %v264_v10 = vadd.f32 %v263_v59, %v133_v4  ;;  %v346_v58 = vpop.permute.xlu1 %345 }
  0xa0   :  { %v236_v61 = vadd.f32 %v235_v52, %v78_v60  ;;  %v240_v62 = vpop.f32.mrf.mxu0  ;;  %v632_v52 = vld [vmem:[%s887_s3 + $0x18] sm:$0xff]  ;;  %v351_v60 = vpop.permute.xlu2 %350 }
  0xa1   :  { %v285_v18 = vmax.f32 %v264_v10, 0.0  ;;  %v241_v42 = vadd.f32 %v240_v62, %v88_v41 }
  0xa2   :  { %v274_v0 = vmax.f32 %v236_v61, 0.0 }
  0xa4   :  { %v856_v1 = vpack.c.bf16 %v274_v0, %v273_v63 }
  0xa6   :  { %v265_v2 = vpop.f32.mrf.mxu3 }
  0xa7   :  { %v266_v11 = vadd.f32 %v265_v2, %v138_v8  ;;  %v336_v4 = vpop.permute.xlu0 %335 }
  0xa8   :  { %v243_v3 = vpop.f32.mrf.mxu0 }
  0xa9   :  { %v286_v19 = vmax.f32 %v266_v11, 0.0  ;;  %v244_v39 = vadd.f32 %v243_v3, %v93_v28  ;;  %v634_v28 = vld [vmem:[%s889_s5 + $0x8] sm:$0xff] }
  0xab   :  { %v303_v23 = vpack.c.bf16 %v286_v19, %v285_v18 }
  0xae   :  { %v268_v5 = vpop.f32.mrf.mxu3 }
  0xaf   :  { %v269_v7 = vadd.f32 %v268_v5, %v143_v44 }
  0xb0   :  { %v245_v6 = vpop.f32.mrf.mxu0 }
  0xb1   :  { %v287_v12 = vmax.f32 %v269_v7, 0.0  ;;  %v246_v36 = vadd.f32 %v245_v6, %v98_v53  ;;  %v630_v53 = vld [vmem:[%s887_s3 + $0x8] sm:$0xff]  ;;  %v326_v6 = vpop.permute.xlu2 %325  ;;  %v341_v7 = vpop.permute.xlu1 %340 }
  0xb3   :  { %v278_v43 = vmax.f32 %v246_v36, 0.0 }
  0xb6   :  { %v270_v9 = vpop.f32.mrf.mxu3 }
  0xb7   :  { %v271_v13 = vadd.f32 %v270_v9, %v148_v46  ;;  %v277_v46 = vmax.f32 %v244_v39, 0.0  ;;  %v331_v9 = vpop.permute.xlu0 %330 }
  0xb8   :  { %v248_v14 = vpop.f32.mrf.mxu0 }
  0xb9   :  { %v288_v15 = vmax.f32 %v271_v13, 0.0  ;;  %v249_v33 = vadd.f32 %v248_v14, %v103_v47  ;;  %v299_v49 = vpack.c.bf16 %v278_v43, %v277_v46  ;;  %v275_v47 = vmax.f32 %v239_v45, 0.0  ;;  %v321_v16 = vpop.permute.xlu2 %320 }
  0xbb   :  { %v304_v20 = vpack.c.bf16 %v288_v15, %v287_v12  ;;  %v279_v40 = vmax.f32 %v249_v33, 0.0 }
  0xbd   :  { %377 = vmatpush.bf16.msra.mxu1 %v304_v20  ;;  %636 = vmatpush.bf16.msra.mxu2 %v304_v20  ;;  %v316_v20 = vpop.permute.xlu1 %315 }
  0xc0   :  { %v250_v24 = vpop.f32.mrf.mxu0 }
  0xc1   :  { %378 = vmatpush.bf16.msra.mxu1 %v303_v23  ;;  %637 = vmatpush.bf16.msra.mxu2 %v303_v23  ;;  %v251_v31 = vadd.f32 %v250_v24, %v108_v51  ;;  %v629_v51 = vld [vmem:[%s887_s3] sm:$0xff]  ;;  %v429_v39 = vpop.permute.xlu2 %428 }
  0xc3   :  { %v280_v37 = vmax.f32 %v251_v31, 0.0  ;;  %v439_v31 = vpop.permute.xlu0 %438 }
  0xc5   :  { %379 = vmatpush.bf16.msra.mxu1 %v302_v25  ;;  %638 = vmatpush.bf16.msra.mxu2 %v302_v25  ;;  %v300_v44 = vpack.c.bf16 %v280_v37, %v279_v40  ;;  %v444_v33 = vpop.permute.xlu1 %443 }
  0xc8   :  { %v253_v27 = vpop.f32.mrf.mxu0 }
  0xc9   :  { %v254_v29 = vadd.f32 %v253_v27, %v113_v48  ;;  %v276_v48 = vmax.f32 %v241_v42, 0.0  ;;  %v633_v27 = vld [vmem:[%s889_s5] sm:$0xff] }
  0xcb   :  { %v281_v34 = vmax.f32 %v254_v29, 0.0  ;;  %v298_v50 = vpack.c.bf16 %v276_v48, %v275_v47  ;;  %v486_v48 = vld [vmem:[%s891_s7] sm:$0x1]  ;;  %s680_s7 = smov [#allocation3]  }
  0xcc   :  { %s538_s0 = sshll.u32 %s680_s7, 4  ;;  %s539_s0 = int_to_ptr.vmem [resolvable:$true] %s538_s0 }
  0xd0   :  { %v255_v30 = vpop.f32.mrf.mxu0 }
  0xd1   :  { %v256_v32 = vadd.f32 %v255_v30, %v118_v26 }
  0xd3   :  { %v282_v35 = vmax.f32 %v256_v32, 0.0 }
  0xd5   :  { %v301_v38 = vpack.c.bf16 %v282_v35, %v281_v34  ;;  %v434_v35 = vpop.permute.xlu0 %433 }
  0xd7   :  { %380 = vmatpush.bf16.msra.mxu1 %v301_v38  ;;  %639 = vmatpush.bf16.msra.mxu2 %v301_v38 }
  0xdb   :  { %381 = vmatpush.bf16.msra.mxu1 %v300_v44  ;;  %640 = vmatpush.bf16.msra.mxu2 %v300_v44 }
  0xdf   :  { %382 = vmatpush.bf16.msra.mxu1 %v299_v49  ;;  %641 = vmatpush.bf16.msra.mxu2 %v299_v49  ;;  %v493_v49 = vpop.permute.xlu1 %492 }
  0xe0   :  { %v495_v47 = vperm.slane %v493_v49, 0 }
  0xe3   :  { %383 = vmatpush.bf16.msra.mxu1 %v298_v50  ;;  %642 = vmatpush.bf16.msra.mxu2 %v298_v50 }
  0xe7   :  { %384 = vmatpush.bf16.msra.mxu1 %v856_v1  ;;  %643 = vmatpush.bf16.msra.mxu2 %v856_v1 }
  0xea   :  { %385 = vmatmul.bf16.vlgmr.msra.gmra.mxu1 %v629_v51  ;;  %400 = vmatmul.bf16.vlgmr.msra.gmra.mxu2 %v632_v52 }
  0xfa   :  { %390 = vmatmul.bf16.gmra.mxu1 %v630_v53 }
 0x10a   :  { %395 = vmatmul.bf16.gmra.mxu1 %v631_v54 }
 0x167   :  { %v386_v55 = vpop.f32.mrf.mxu1 }
 0x168   :  { %v387_v21 = vadd.f32 %v386_v55, %v316_v20 }
 0x16a   :  { %v406_v25 = vmax.f32 %v387_v21, 0.0 }
 0x16d   :  { %v401_v56 = vpop.f32.mrf.mxu2 }
 0x16e   :  { %v402_v59 = vadd.f32 %v401_v56, %v346_v58 }
 0x16f   :  { %v388_v57 = vpop.f32.mrf.mxu1 }
 0x170   :  { %v412_v0 = vmax.f32 %v402_v59, 0.0  ;;  %v389_v17 = vadd.f32 %v388_v57, %v321_v16 }
 0x172   :  { %v407_v23 = vmax.f32 %v389_v17, 0.0 }
 0x174   :  { %v418_v26 = vpack.c.bf16 %v407_v23, %v406_v25 }
 0x175   :  { %v403_v61 = vpop.f32.mrf.mxu2 }
 0x176   :  { %v404_v62 = vadd.f32 %v403_v61, %v351_v60 }
 0x177   :  { %v391_v63 = vpop.f32.mrf.mxu1 }
 0x178   :  { %v413_v1 = vmax.f32 %v404_v62, 0.0  ;;  %v392_v13 = vadd.f32 %v391_v63, %v326_v6 }
 0x17a   :  { %v421_v2 = vpack.c.bf16 %v413_v1, %v412_v0  ;;  %v408_v22 = vmax.f32 %v392_v13, 0.0 }
 0x17c   :  { %467 = vmatpush.bf16.msrb.mxu2 %v421_v2 }
 0x17f   :  { %v393_v3 = vpop.f32.mrf.mxu1 }
 0x180   :  { %v394_v11 = vadd.f32 %v393_v3, %v331_v9 }
 0x182   :  { %v409_v18 = vmax.f32 %v394_v11, 0.0 }
 0x184   :  { %v419_v24 = vpack.c.bf16 %v409_v18, %v408_v22 }
 0x187   :  { %v396_v5 = vpop.f32.mrf.mxu1 }
 0x188   :  { %v397_v8 = vadd.f32 %v396_v5, %v336_v4 }
 0x18a   :  { %v410_v14 = vmax.f32 %v397_v8, 0.0 }
 0x18f   :  { %v398_v10 = vpop.f32.mrf.mxu1 }
 0x190   :  { %v399_v12 = vadd.f32 %v398_v10, %v341_v7 }
 0x192   :  { %v411_v15 = vmax.f32 %v399_v12, 0.0 }
 0x194   :  { %v420_v19 = vpack.c.bf16 %v411_v15, %v410_v14 }
 0x196   :  { %468 = vmatpush.bf16.msrb.mxu2 %v420_v19 }
 0x19a   :  { %469 = vmatpush.bf16.msrb.mxu2 %v419_v24 }
 0x19e   :  { %470 = vmatpush.bf16.msrb.mxu2 %v418_v26 }
 0x1a1   :  { %617 = vmatmul.msk.bf16.vlgmr.msrb.gmra.mxu2 %vm456_vm2, %v633_v27 }
 0x1b1   :  { %618 = vmatmul.msk.bf16.gmra.mxu2 %vm456_vm2, %v634_v28 }
 0x224   :  { %v472_v29 = vpop.f32.mrf.mxu2 }
 0x225   :  { %v473_v40 = vadd.f32 %v472_v29, %v429_v39 }
 0x227   :  { %v482_v45 = vmax.f32 %v473_v40, 0.0 }
 0x22c   :  { %v474_v30 = vpop.f32.mrf.mxu2 }
 0x22d   :  { %v475_v37 = vadd.f32 %v474_v30, %v434_v35 }
 0x22f   :  { %v483_v43 = vmax.f32 %v475_v37, 0.0 }
 0x231   :  { %v487_v46 = vpack.c.bf16 %v483_v43, %v482_v45 }
 0x234   :  { %v477_v32 = vpop.f32.mrf.mxu2 }
 0x235   :  { %v478_v34 = vadd.f32 %v477_v32, %v439_v31 }
 0x237   :  { %v484_v41 = vmax.f32 %v478_v34, 0.0 }
 0x23c   :  { %v479_v36 = vpop.f32.mrf.mxu2 }
 0x23d   :  { %v480_v38 = vadd.f32 %v479_v36, %v444_v33 }
 0x23f   :  { %v485_v42 = vmax.f32 %v480_v38, 0.0 }
 0x241   :  { %v488_v44 = vpack.c.bf16 %v485_v42, %v484_v41 }
 0x243   :  { %506 = vmatpush.bf16.msrb.mxu3 %v488_v44 }
 0x247   :  { %507 = vmatpush.bf16.msrb.mxu3 %v487_v46 }
 0x24a   :  { %619 = vmatmul.msk.bf16.vlgmr.msrb.gmra.mxu3 %vm496_vm3, %v486_v48 }
 0x2cd   :  { %v509_v50 = vpop.f32.mrf.mxu3 }
 0x2ce   :  { %v510_v51 = vadd.f32 %v509_v50, %v495_v47 }
 0x2d0   :  { %v513_v52 = vsub.f32 0.0, %v510_v51 }
 0x2d2   :  { %v514_v53 = vmul.f32 1.442695, %v513_v52 }
 0x2d4   :  { %649 = vpow2.f32 %v514_v53 }
 0x2d5   :  { %v511_v54 = vpop.f32.mrf.mxu3 }
 0x2da   :  { %v650_v55 = vpop.eup %649 }
 0x2db   :  { %v516_v56 = vadd.f32 1.0, %v650_v55 }
 0x2dd   :  { %651 = vrcp.f32 %v516_v56  ;;  %v528_v60 = vand.u32 2147483648, %v516_v56  ;;  %v526_v62 = vand.u32 2147483647, %v516_v56  ;;  %vm522_vm5 = vweird.f32 %v516_v56 }
 0x2df   :  { %v529_v0 = vor.u32 1.1754944e-38, %v528_v60  ;;  %vm527_vm8 = vcmp.eq.f32.partialorder %v526_v62, 8.507059e+37 }
 0x2e3   :  { %v652_v57 = vpop.eup %651 }
 0x2e4   :  { %v518_v58 = vmul.f32 %v652_v57, %v516_v56  ;;  %vm523_vm4 = vweird.f32 %v652_v57 }
 0x2e5   :  { %vm524_vm6 = vmor %vm522_vm5, %vm523_vm4 }
 0x2e6   :  { %v519_v59 = vsub.f32 1.0, %v518_v58 }
 0x2e8   :  { %v520_v61 = vmul.f32 %v652_v57, %v519_v59 }
 0x2ea   :  { %v521_v63 = vadd.f32 %v652_v57, %v520_v61 }
 0x2ec   :  { %v525_v1 = vsel %vm524_vm6, %v652_v57, %v521_v63 }
 0x2ed   :  { %v530_v2 = vsel %vm527_vm8, %v529_v0, %v525_v1 }
 0x2ee   :  { %532 = vst.msk [vmem:[#allocation3] sm:$0x1] %vm531_vm7, %v530_v2 }
 0x2ef   :  { %543 = dma.vmem_to_hbm [thread:$0]  %s539_s0, 16, %s541_s26, [#allocation4]  }
 0x2f0   :  { %677 = dma.done.wait [#allocation4], 16  }
 0x2f1   :  { %678 = vsyncadd [#allocation4], 4294967280 }
 0x2f2   :  { %548 = vsyncpa [#allocation4], 1 }

</bundles_post_ra>
